<compile_context>
chip_gen: v6e
topology: v6e:2x2x1
jax: 0.10.0
libtpu: 0.0.40
codegen_flags: <defaults>
</compile_context>

<pallas_src>
import functools

import jax
import jax.numpy as jnp
from jax import lax
from jax.experimental import pallas as pl
from jax.experimental.pallas import tpu as pltpu

C_GATE = 8.0
_SUB = 8  # timesteps per scan block (= one f32 vreg sublane group)


def _round_up(x, m):
    return (x + m - 1) // m * m


def _rglru_kernel(logsig_c_ref, wri_ref, x_ref, o_ref, a_sc, g_sc, h_ref, *,
                  unroll):
    t_chunk = pl.program_id(1)
    t_tile = x_ref.shape[1]
    d = x_ref.shape[2]

    # New sequence for this batch element: reset the carried hidden state.
    @pl.when(t_chunk == 0)
    def _():
        h_ref[...] = jnp.zeros_like(h_ref)

    # ---- Gate projections: one fused bf16 MXU matmul, f32 accumulation -----
    x_bf = x_ref[0]                                               # (T, D) bf16
    x = x_bf.astype(jnp.float32)
    ri = jnp.dot(x_bf, wri_ref[...], preferred_element_type=jnp.float32)
    r = jax.nn.sigmoid(ri[:, :d])
    i = jax.nn.sigmoid(ri[:, d:])

    # a = sigmoid(lambd) ** (c*r) == exp(r * (c * log_sigmoid(lambd)))  (stable;
    # c * log_sigmoid(lambd) precomputed in the wrapper).
    a = jnp.exp(r * logsig_c_ref[...])                            # (T, D)
    g = jnp.sqrt(jnp.maximum(1.0 - a * a, 0.0)) * (i * x)         # (T, D)

    # Single full-tile write of the per-step affine coefficients; the scan
    # below re-reads them as aligned (8, D) slices.
    a_sc[...] = a
    g_sc[...] = g

    # ---- Blocked serial scan: per-8-step prefix in registers ----------------
    # Row t of a block holds the affine map f_t(h) = a_t*h + g_t.  Three
    # Hillis-Steele rounds (sublane shifts 1/2/4 via pltpu.roll, identity-masked
    # at the block head) compose them so row t holds the map for all steps of
    # the block up to t; one FMA against the carried-in hidden state then
    # yields the 8 block outputs at once.
    row = lax.broadcasted_iota(jnp.int32, (_SUB, d), 0)
    keeps = tuple(row >= s for s in (1, 2, 4))    # hoisted: not CSE'd in loops

    def body(c, h_prev):                                          # h_prev: (1, D)
        t0 = pl.multiple_of(c * _SUB, _SUB)
        A = a_sc[pl.ds(t0, _SUB), :]                              # (8, D)
        G = g_sc[pl.ds(t0, _SUB), :]                              # (8, D)
        for shift, keep in zip((1, 2, 4), keeps):                 # static unroll
            A_sh = jnp.where(keep, pltpu.roll(A, shift, axis=0), 1.0)
            G_sh = jnp.where(keep, pltpu.roll(G, shift, axis=0), 0.0)
            G = A * G_sh + G
            A = A * A_sh
        h_blk = A * h_prev + G                                    # (8, D) fma
        o_ref[0, pl.ds(t0, _SUB), :] = h_blk.astype(o_ref.dtype)  # dense store
        return h_blk[_SUB - 1:_SUB, :]                            # next carry

    n_blocks = t_tile // _SUB
    h_last = lax.fori_loop(0, n_blocks, body, h_ref[...],
                           unroll=min(unroll, max(n_blocks, 1)))
    h_ref[...] = h_last                                           # carry h_{T-1}


def _vmem_capacity_bytes():
    try:
        return int(pltpu.get_tpu_info().vmem_capacity_bytes)
    except Exception:
        return 64 * 1024 * 1024   # conservative default (v7x per-TensorCore)


def _footprint_bytes(t_tile, d_pad, out_bytes):
    """Upper-bound VMEM footprint of one grid step (double-buffered pipeline)."""
    return (2 * t_tile * d_pad * 2            # x blocks (bf16)
            + 2 * t_tile * d_pad * out_bytes  # output blocks
            + 2 * d_pad * (2 * d_pad) * 2     # fused weight blocks (bf16)
            + 2 * _SUB * d_pad * 4            # logsig blocks (row-padded)
            + 2 * t_tile * d_pad * 4          # a / g scratch
            + t_tile * (2 * d_pad) * 4        # ri matmul result
            + 2 * t_tile * d_pad * 4          # elementwise temporaries headroom
            + _SUB * d_pad * 4)               # hidden-state carry


def rglru_forward(x, w_r, w_i, lambd, *, t_tile=None, out_dtype=jnp.float32):
    """x: (B, T, D) f32; w_r, w_i: (D, D) nn.Linear weights (out, in); lambd: (D,)."""
    B, T, D = x.shape
    out_bytes = jnp.dtype(out_dtype).itemsize

    # Lane-dense layout: pad D to a multiple of 128 (zero padding keeps the real
    # columns exact; padded columns stay identically zero and are sliced off).
    D_pad = _round_up(max(D, 128), 128)
    if D_pad != D:
        x = jnp.pad(x, ((0, 0), (0, 0), (0, D_pad - D)))
        w_r = jnp.pad(w_r, ((0, D_pad - D), (0, D_pad - D)))
        w_i = jnp.pad(w_i, ((0, D_pad - D), (0, D_pad - D)))
        lambd = jnp.pad(lambd, (0, D_pad - D))

    # ---- Tile-size / VMEM-limit selection (sized per chip generation) -------
    capacity = _vmem_capacity_bytes()
    if t_tile is None:
        t_tile = max(_SUB, _round_up(min(T, 2048), _SUB))
        while (t_tile > _SUB
               and _footprint_bytes(t_tile, D_pad, out_bytes) > 0.55 * capacity):
            t_tile = max(_SUB, _round_up(t_tile // 2, _SUB))
    t_tile = max(_SUB, _round_up(t_tile, _SUB))
    T_pad = _round_up(T, t_tile)
    if T_pad != T:
        # Padded tail timesteps compute garbage h; they are sliced off below and
        # their end-of-chunk carry is never consumed.
        x = jnp.pad(x, ((0, 0), (0, T_pad - T), (0, 0)))

    footprint = _footprint_bytes(t_tile, D_pad, out_bytes)
    vmem_limit = int(min(max(int(1.5 * footprint), 32 * 1024 * 1024),
                         int(0.9 * capacity)))

    # Wrapper-side operand prep: bf16 MXU operands, fused [W_r^T | W_i^T],
    # precomputed c * log_sigmoid(lambd) (drops two full VALU passes in-kernel).
    x_bf = x.astype(jnp.bfloat16)
    wri = jnp.concatenate([w_r.T, w_i.T], axis=1).astype(jnp.bfloat16)  # (D, 2D)
    logsig_c = (C_GATE * jax.nn.log_sigmoid(lambd.astype(jnp.float32))
                ).reshape(1, D_pad)

    num_t_chunks = T_pad // t_tile
    unroll = 2 if D_pad >= 2048 else 4            # cap vreg pressure at large D

    grid_spec = pltpu.PrefetchScalarGridSpec(
        num_scalar_prefetch=0,
        # The T-chunk axis MUST be the innermost (fastest) grid axis and stay
        # "arbitrary" so the (1, D) hidden-state scratch carries correctly.
        grid=(B, num_t_chunks),
        in_specs=[
            pl.BlockSpec((1, D_pad), lambda b, t: (0, 0)),            # c*logsig(lambd)
            pl.BlockSpec((D_pad, 2 * D_pad), lambda b, t: (0, 0)),    # [W_r^T | W_i^T]
            pl.BlockSpec((1, t_tile, D_pad), lambda b, t: (b, t, 0)),  # x
        ],
        out_specs=pl.BlockSpec((1, t_tile, D_pad), lambda b, t: (b, t, 0)),
        scratch_shapes=[
            pltpu.VMEM((t_tile, D_pad), jnp.float32),   # a (per-step decay)
            pltpu.VMEM((t_tile, D_pad), jnp.float32),   # g (per-step input)
            pltpu.VMEM((1, D_pad), jnp.float32),        # hidden-state carry
        ],
    )

    out = pl.pallas_call(
        functools.partial(_rglru_kernel, unroll=unroll),
        out_shape=jax.ShapeDtypeStruct((B, T_pad, D_pad), out_dtype),
        grid_spec=grid_spec,
        compiler_params=pltpu.CompilerParams(
            dimension_semantics=("parallel", "arbitrary"),
            vmem_limit_bytes=vmem_limit),
    )(logsig_c, wri, x_bf)

    if T_pad != T or D_pad != D:
        out = out[:, :T, :D]
    return out


def rglru_reference(x, w_r, w_i, lambd):
    # Matches the kernel's numerics: bf16 MXU operands, f32 accumulation, f32 scan.
    xb = x.astype(jnp.bfloat16)
    xf = xb.astype(jnp.float32)
    r = jax.nn.sigmoid(jnp.einsum("btd,od->bto", xb, w_r.astype(jnp.bfloat16),
                                  preferred_element_type=jnp.float32))
    i = jax.nn.sigmoid(jnp.einsum("btd,od->bto", xb, w_i.astype(jnp.bfloat16),
                                  preferred_element_type=jnp.float32))
    a = jax.nn.sigmoid(lambd.astype(jnp.float32))[None, None, :] ** (C_GATE * r)
    g = jnp.sqrt(jnp.maximum(1.0 - a * a, 0.0)) * (i * xf)

    def step(h, inp):
        a_t, g_t = inp
        h_new = a_t * h + g_t
        return h_new, h_new

    B, T, D = x.shape
    h0 = jnp.zeros((B, D), jnp.float32)
    _, hs = lax.scan(step, h0, (jnp.swapaxes(a, 0, 1), jnp.swapaxes(g, 0, 1)))
    return jnp.swapaxes(hs, 0, 1)


if __name__ == "__main__":
    B, T, D = 2, 32, 128
    key = jax.random.PRNGKey(0)
    kx, kr, ki, kl = jax.random.split(key, 4)

    x = jax.random.normal(kx, (B, T, D), jnp.float32)
    # Deterministic parameter init (nn.Linear-style uniform; lambd ~ N(0,1)).
    bound = 1.0 / (D ** 0.5)
    w_r = jax.random.uniform(kr, (D, D), jnp.float32, -bound, bound)
    w_i = jax.random.uniform(ki, (D, D), jnp.float32, -bound, bound)
    lambd = jax.random.normal(kl, (D,), jnp.float32)
    # TODO(synk): reference `scan()` and `reset_parameters()` are undefined in the
    # PyTorch source; canonical Griffin RG-LRU recurrence / deterministic init used.

    # t_tile=16 exercises both the cross-tile hidden-state carry (grid T axis)
    # and the in-register 8-step blocked prefix inside each tile.
    out = jax.block_until_ready(rglru_forward(x, w_r, w_i, lambd, t_tile=16))
    ref = rglru_reference(x, w_r, w_i, lambd)

    assert out.shape == (B, T, D)
    err = float(jnp.max(jnp.abs(out - ref)))
    assert jnp.allclose(out, ref, atol=1e-3, rtol=1e-3), err
    print("KERNEL_OK")
</pallas_src>

<mosaic_0001>
module attributes {stable_mosaic.version = 11 : i64} {
  func.func @_rglru_kernel(%arg0: i32, %arg1: i32, %arg2: memref<1x128xf32, #tpu.memory_space<vmem>>, %arg3: memref<128x256xbf16, #tpu.memory_space<vmem>>, %arg4: memref<1x16x128xbf16, #tpu.memory_space<vmem>>, %arg5: memref<1x16x128xf32, #tpu.memory_space<vmem>>, %arg6: memref<16x128xf32, #tpu.memory_space<vmem>>, %arg7: memref<16x128xf32, #tpu.memory_space<vmem>>, %arg8: memref<1x128xf32, #tpu.memory_space<vmem>>) attributes {dimension_semantics = [#tpu.dimension_semantics<parallel>, #tpu.dimension_semantics<arbitrary>], iteration_bounds = array<i64: 2, 2>, scalar_prefetch = 0 : i64, scratch_operands = 3 : i64, tpu.core_type = #tpu.core_type<tc>, window_params = [{pipeline_mode = #tpu.pipeline_mode<synchronous>, transform_indices = @transform_0, window_bounds = array<i64: 1, 128>}, {pipeline_mode = #tpu.pipeline_mode<synchronous>, transform_indices = @transform_1, window_bounds = array<i64: 128, 256>}, {transform_indices = @transform_2, window_bounds = array<i64: 1, 16, 128>}, {transform_indices = @transform_3, window_bounds = array<i64: 1, 16, 128>}]} {
    %c0_i32 = arith.constant 0 : i32
    %0 = arith.cmpi eq, %arg1, %c0_i32 : i32
    %1 = arith.extui %0 : i1 to i32
    %c0_i32_0 = arith.constant 0 : i32
    %2 = arith.cmpi ne, %1, %c0_i32_0 : i32
    scf.if %2 {
      %cst_55 = arith.constant 0.000000e+00 : f32
      %125 = vector.broadcast %cst_55 : f32 to vector<1x128xf32>
      %c0_56 = arith.constant 0 : index
      %c0_57 = arith.constant 0 : index
      %126 = vector.load %arg8[%c0_56, %c0_57] : memref<1x128xf32, #tpu.memory_space<vmem>>, vector<1x128xf32>
      tpu.vector_store %arg8[%c0_56, %c0_57], %125 {strides = array<i32>} : memref<1x128xf32, #tpu.memory_space<vmem>>, vector<1x128xf32>,
    } else {
    }
    %c0 = arith.constant 0 : index
    %c0_1 = arith.constant 0 : index
    %c0_2 = arith.constant 0 : index
    %3 = vector.load %arg4[%c0, %c0_1, %c0_2] : memref<1x16x128xbf16, #tpu.memory_space<vmem>>, vector<1x16x128xbf16>
    %4 = vector.shape_cast %3 : vector<1x16x128xbf16> to vector<16x128xbf16>
    %5 = arith.extf %4 : vector<16x128xbf16> to vector<16x128xf32>
    %c0_3 = arith.constant 0 : index
    %c0_4 = arith.constant 0 : index
    %6 = vector.load %arg3[%c0_3, %c0_4] : memref<128x256xbf16, #tpu.memory_space<vmem>>, vector<128x256xbf16>
    %cst = arith.constant dense<0.000000e+00> : vector<16x256xf32>
    %7 = tpu.matmul %4, %6, %cst {dimension_numbers = #tpu.dot_dimension_numbers<[1], [0], [0], [1], [0, 0, 1, 1], [], []>} : vector<16x128xbf16>, vector<128x256xbf16>, vector<16x256xf32> -> vector<16x256xf32>
    %8 = vector.extract_strided_slice %7 {offsets = [0, 0], sizes = [16, 128], strides = [1, 1]} : vector<16x256xf32> to vector<16x128xf32>
    %9 = arith.negf %8 : vector<16x128xf32>
    %10 = math.exp %9 : vector<16x128xf32>
    %cst_5 = arith.constant 1.000000e+00 : f32
    %11 = vector.broadcast %cst_5 : f32 to vector<16x128xf32>
    %12 = arith.addf %11, %10 : vector<16x128xf32>
    %13 = arith.divf %11, %12 : vector<16x128xf32>
    %14 = vector.extract_strided_slice %7 {offsets = [0, 128], sizes = [16, 128], strides = [1, 1]} : vector<16x256xf32> to vector<16x128xf32>
    %15 = arith.negf %14 : vector<16x128xf32>
    %16 = math.exp %15 : vector<16x128xf32>
    %cst_6 = arith.constant 1.000000e+00 : f32
    %17 = vector.broadcast %cst_6 : f32 to vector<16x128xf32>
    %18 = arith.addf %17, %16 : vector<16x128xf32>
    %19 = arith.divf %17, %18 : vector<16x128xf32>
    %c0_7 = arith.constant 0 : index
    %c0_8 = arith.constant 0 : index
    %20 = vector.load %arg2[%c0_7, %c0_8] : memref<1x128xf32, #tpu.memory_space<vmem>>, vector<1x128xf32>
    %21 = vector.broadcast %20 : vector<1x128xf32> to vector<16x128xf32>
    %22 = arith.mulf %13, %21 : vector<16x128xf32>
    %23 = math.exp %22 : vector<16x128xf32>
    %24 = arith.mulf %23, %23 : vector<16x128xf32>
    %cst_9 = arith.constant 1.000000e+00 : f32
    %25 = vector.broadcast %cst_9 : f32 to vector<16x128xf32>
    %26 = arith.subf %25, %24 : vector<16x128xf32>
    %cst_10 = arith.constant 0.000000e+00 : f32
    %27 = vector.broadcast %cst_10 : f32 to vector<16x128xf32>
    %28 = arith.maximumf %26, %27 : vector<16x128xf32>
    %29 = math.sqrt %28 : vector<16x128xf32>
    %30 = arith.mulf %19, %5 : vector<16x128xf32>
    %31 = arith.mulf %29, %30 : vector<16x128xf32>
    %c0_11 = arith.constant 0 : index
    %c0_12 = arith.constant 0 : index
    %32 = vector.load %arg6[%c0_11, %c0_12] : memref<16x128xf32, #tpu.memory_space<vmem>>, vector<16x128xf32>
    tpu.vector_store %arg6[%c0_11, %c0_12], %23 {strides = array<i32>} : memref<16x128xf32, #tpu.memory_space<vmem>>, vector<16x128xf32>,
    %c0_13 = arith.constant 0 : index
    %c0_14 = arith.constant 0 : index
    %33 = vector.load %arg7[%c0_13, %c0_14] : memref<16x128xf32, #tpu.memory_space<vmem>>, vector<16x128xf32>
    tpu.vector_store %arg7[%c0_13, %c0_14], %31 {strides = array<i32>} : memref<16x128xf32, #tpu.memory_space<vmem>>, vector<16x128xf32>,
    %34 = tpu.iota {dimensions = array<i32: 0>} : vector<8x128xi32>
    %c1_i32 = arith.constant 1 : i32
    %35 = vector.broadcast %c1_i32 : i32 to vector<8x128xi32>
    %36 = arith.cmpi sge, %34, %35 : vector<8x128xi32>
    %c2_i32 = arith.constant 2 : i32
    %37 = vector.broadcast %c2_i32 : i32 to vector<8x128xi32>
    %38 = arith.cmpi sge, %34, %37 : vector<8x128xi32>
    %c4_i32 = arith.constant 4 : i32
    %39 = vector.broadcast %c4_i32 : i32 to vector<8x128xi32>
    %40 = arith.cmpi sge, %34, %39 : vector<8x128xi32>
    %c0_15 = arith.constant 0 : index
    %c0_16 = arith.constant 0 : index
    %41 = vector.load %arg8[%c0_15, %c0_16] : memref<1x128xf32, #tpu.memory_space<vmem>>, vector<1x128xf32>
    %c0_i32_17 = arith.constant 0 : i32
    %c8_i32 = arith.constant 8 : i32
    %42 = arith.muli %c0_i32_17, %c8_i32 : i32
    %43 = tpu.assume_multiple %42, 8 : i32
    %44 = arith.index_cast %43 : i32 to index
    %c0_18 = arith.constant 0 : index
    %45 = vector.load %arg6[%44, %c0_18] : memref<16x128xf32, #tpu.memory_space<vmem>>, vector<8x128xf32>
    %46 = arith.index_cast %43 : i32 to index
    %c0_19 = arith.constant 0 : index
    %47 = vector.load %arg7[%46, %c0_19] : memref<16x128xf32, #tpu.memory_space<vmem>>, vector<8x128xf32>
    %c1_i32_20 = arith.constant 1 : i32
    %48 = tpu.dynamic_rotate %45 by %c1_i32_20 dim 0 : vector<8x128xf32>, i32 -> vector<8x128xf32>
    %cst_21 = arith.constant 1.000000e+00 : f32
    %49 = vector.broadcast %cst_21 : f32 to vector<8x128xf32>
    %50 = arith.select %36, %48, %49 : vector<8x128xi1>, vector<8x128xf32>
    %c1_i32_22 = arith.constant 1 : i32
    %51 = tpu.dynamic_rotate %47 by %c1_i32_22 dim 0 : vector<8x128xf32>, i32 -> vector<8x128xf32>
    %cst_23 = arith.constant 0.000000e+00 : f32
    %52 = vector.broadcast %cst_23 : f32 to vector<8x128xf32>
    %53 = arith.select %36, %51, %52 : vector<8x128xi1>, vector<8x128xf32>
    %54 = arith.mulf %45, %53 : vector<8x128xf32>
    %55 = arith.addf %54, %47 : vector<8x128xf32>
    %56 = arith.mulf %45, %50 : vector<8x128xf32>
    %c2_i32_24 = arith.constant 2 : i32
    %57 = tpu.dynamic_rotate %56 by %c2_i32_24 dim 0 : vector<8x128xf32>, i32 -> vector<8x128xf32>
    %cst_25 = arith.constant 1.000000e+00 : f32
    %58 = vector.broadcast %cst_25 : f32 to vector<8x128xf32>
    %59 = arith.select %38, %57, %58 : vector<8x128xi1>, vector<8x128xf32>
    %c2_i32_26 = arith.constant 2 : i32
    %60 = tpu.dynamic_rotate %55 by %c2_i32_26 dim 0 : vector<8x128xf32>, i32 -> vector<8x128xf32>
    %cst_27 = arith.constant 0.000000e+00 : f32
    %61 = vector.broadcast %cst_27 : f32 to vector<8x128xf32>
    %62 = arith.select %38, %60, %61 : vector<8x128xi1>, vector<8x128xf32>
    %63 = arith.mulf %56, %62 : vector<8x128xf32>
    %64 = arith.addf %63, %55 : vector<8x128xf32>
    %65 = arith.mulf %56, %59 : vector<8x128xf32>
    %c4_i32_28 = arith.constant 4 : i32
    %66 = tpu.dynamic_rotate %65 by %c4_i32_28 dim 0 : vector<8x128xf32>, i32 -> vector<8x128xf32>
    %cst_29 = arith.constant 1.000000e+00 : f32
    %67 = vector.broadcast %cst_29 : f32 to vector<8x128xf32>
    %68 = arith.select %40, %66, %67 : vector<8x128xi1>, vector<8x128xf32>
    %c4_i32_30 = arith.constant 4 : i32
    %69 = tpu.dynamic_rotate %64 by %c4_i32_30 dim 0 : vector<8x128xf32>, i32 -> vector<8x128xf32>
    %cst_31 = arith.constant 0.000000e+00 : f32
    %70 = vector.broadcast %cst_31 : f32 to vector<8x128xf32>
    %71 = arith.select %40, %69, %70 : vector<8x128xi1>, vector<8x128xf32>
    %72 = arith.mulf %65, %71 : vector<8x128xf32>
    %73 = arith.addf %72, %64 : vector<8x128xf32>
    %74 = arith.mulf %65, %68 : vector<8x128xf32>
    %75 = vector.broadcast %41 : vector<1x128xf32> to vector<8x128xf32>
    %76 = arith.mulf %74, %75 : vector<8x128xf32>
    %77 = arith.addf %76, %73 : vector<8x128xf32>
    %c0_32 = arith.constant 0 : index
    %78 = arith.index_cast %43 : i32 to index
    %c0_33 = arith.constant 0 : index
    %79 = vector.load %arg5[%c0_32, %78, %c0_33] : memref<1x16x128xf32, #tpu.memory_space<vmem>>, vector<1x8x128xf32>
    %80 = vector.shape_cast %79 : vector<1x8x128xf32> to vector<8x128xf32>
    %81 = vector.shape_cast %77 : vector<8x128xf32> to vector<1x8x128xf32>
    tpu.vector_store %arg5[%c0_32, %78, %c0_33], %81 {strides = array<i32>} : memref<1x16x128xf32, #tpu.memory_space<vmem>>, vector<1x8x128xf32>,
    %82 = vector.extract_strided_slice %77 {offsets = [7, 0], sizes = [1, 128], strides = [1, 1]} : vector<8x128xf32> to vector<1x128xf32>
    %c1_i32_34 = arith.constant 1 : i32
    %c8_i32_35 = arith.constant 8 : i32
    %83 = arith.muli %c1_i32_34, %c8_i32_35 : i32
    %84 = tpu.assume_multiple %83, 8 : i32
    %85 = arith.index_cast %84 : i32 to index
    %c0_36 = arith.constant 0 : index
    %86 = vector.load %arg6[%85, %c0_36] : memref<16x128xf32, #tpu.memory_space<vmem>>, vector<8x128xf32>
    %87 = arith.index_cast %84 : i32 to index
    %c0_37 = arith.constant 0 : index
    %88 = vector.load %arg7[%87, %c0_37] : memref<16x128xf32, #tpu.memory_space<vmem>>, vector<8x128xf32>
    %c1_i32_38 = arith.constant 1 : i32
    %89 = tpu.dynamic_rotate %86 by %c1_i32_38 dim 0 : vector<8x128xf32>, i32 -> vector<8x128xf32>
    %cst_39 = arith.constant 1.000000e+00 : f32
    %90 = vector.broadcast %cst_39 : f32 to vector<8x128xf32>
    %91 = arith.select %36, %89, %90 : vector<8x128xi1>, vector<8x128xf32>
    %c1_i32_40 = arith.constant 1 : i32
    %92 = tpu.dynamic_rotate %88 by %c1_i32_40 dim 0 : vector<8x128xf32>, i32 -> vector<8x128xf32>
    %cst_41 = arith.constant 0.000000e+00 : f32
    %93 = vector.broadcast %cst_41 : f32 to vector<8x128xf32>
    %94 = arith.select %36, %92, %93 : vector<8x128xi1>, vector<8x128xf32>
    %95 = arith.mulf %86, %94 : vector<8x128xf32>
    %96 = arith.addf %95, %88 : vector<8x128xf32>
    %97 = arith.mulf %86, %91 : vector<8x128xf32>
    %c2_i32_42 = arith.constant 2 : i32
    %98 = tpu.dynamic_rotate %97 by %c2_i32_42 dim 0 : vector<8x128xf32>, i32 -> vector<8x128xf32>
    %cst_43 = arith.constant 1.000000e+00 : f32
    %99 = vector.broadcast %cst_43 : f32 to vector<8x128xf32>
    %100 = arith.select %38, %98, %99 : vector<8x128xi1>, vector<8x128xf32>
    %c2_i32_44 = arith.constant 2 : i32
    %101 = tpu.dynamic_rotate %96 by %c2_i32_44 dim 0 : vector<8x128xf32>, i32 -> vector<8x128xf32>
    %cst_45 = arith.constant 0.000000e+00 : f32
    %102 = vector.broadcast %cst_45 : f32 to vector<8x128xf32>
    %103 = arith.select %38, %101, %102 : vector<8x128xi1>, vector<8x128xf32>
    %104 = arith.mulf %97, %103 : vector<8x128xf32>
    %105 = arith.addf %104, %96 : vector<8x128xf32>
    %106 = arith.mulf %97, %100 : vector<8x128xf32>
    %c4_i32_46 = arith.constant 4 : i32
    %107 = tpu.dynamic_rotate %106 by %c4_i32_46 dim 0 : vector<8x128xf32>, i32 -> vector<8x128xf32>
    %cst_47 = arith.constant 1.000000e+00 : f32
    %108 = vector.broadcast %cst_47 : f32 to vector<8x128xf32>
    %109 = arith.select %40, %107, %108 : vector<8x128xi1>, vector<8x128xf32>
    %c4_i32_48 = arith.constant 4 : i32
    %110 = tpu.dynamic_rotate %105 by %c4_i32_48 dim 0 : vector<8x128xf32>, i32 -> vector<8x128xf32>
    %cst_49 = arith.constant 0.000000e+00 : f32
    %111 = vector.broadcast %cst_49 : f32 to vector<8x128xf32>
    %112 = arith.select %40, %110, %111 : vector<8x128xi1>, vector<8x128xf32>
    %113 = arith.mulf %106, %112 : vector<8x128xf32>
    %114 = arith.addf %113, %105 : vector<8x128xf32>
    %115 = arith.mulf %106, %109 : vector<8x128xf32>
    %116 = vector.broadcast %82 : vector<1x128xf32> to vector<8x128xf32>
    %117 = arith.mulf %115, %116 : vector<8x128xf32>
    %118 = arith.addf %117, %114 : vector<8x128xf32>
    %c0_50 = arith.constant 0 : index
    %119 = arith.index_cast %84 : i32 to index
    %c0_51 = arith.constant 0 : index
    %120 = vector.load %arg5[%c0_50, %119, %c0_51] : memref<1x16x128xf32, #tpu.memory_space<vmem>>, vector<1x8x128xf32>
    %121 = vector.shape_cast %120 : vector<1x8x128xf32> to vector<8x128xf32>
    %122 = vector.shape_cast %118 : vector<8x128xf32> to vector<1x8x128xf32>
    tpu.vector_store %arg5[%c0_50, %119, %c0_51], %122 {strides = array<i32>} : memref<1x16x128xf32, #tpu.memory_space<vmem>>, vector<1x8x128xf32>,
    %123 = vector.extract_strided_slice %118 {offsets = [7, 0], sizes = [1, 128], strides = [1, 1]} : vector<8x128xf32> to vector<1x128xf32>
    %c2_i32_52 = arith.constant 2 : i32
    %c0_53 = arith.constant 0 : index
    %c0_54 = arith.constant 0 : index
    %124 = vector.load %arg8[%c0_53, %c0_54] : memref<1x128xf32, #tpu.memory_space<vmem>>, vector<1x128xf32>
    tpu.vector_store %arg8[%c0_53, %c0_54], %123 {strides = array<i32>} : memref<1x128xf32, #tpu.memory_space<vmem>>, vector<1x128xf32>,
    return
  }
  func.func @transform_0(%arg0: i32, %arg1: i32) -> (i32, i32) {
    %c0_i32 = arith.constant 0 : i32
    %c0_i32_0 = arith.constant 0 : i32
    %c0_i32_1 = arith.constant 0 : i32
    return %c0_i32, %c0_i32_0 : i32, i32
  }
  func.func @transform_1(%arg0: i32, %arg1: i32) -> (i32, i32) {
    %c0_i32 = arith.constant 0 : i32
    %c0_i32_0 = arith.constant 0 : i32
    %c0_i32_1 = arith.constant 0 : i32
    return %c0_i32, %c0_i32_0 : i32, i32
  }
  func.func @transform_2(%arg0: i32, %arg1: i32) -> (i32, i32, i32) {
    %c0_i32 = arith.constant 0 : i32
    %c0_i32_0 = arith.constant 0 : i32
    return %arg0, %arg1, %c0_i32 : i32, i32, i32
  }
  func.func @transform_3(%arg0: i32, %arg1: i32) -> (i32, i32, i32) {
    %c0_i32 = arith.constant 0 : i32
    %c0_i32_0 = arith.constant 0 : i32
    return %arg0, %arg1, %c0_i32 : i32, i32, i32
  }
}

</mosaic_0001>

<bundles_post_ra>
// kernel: tpu_custom_call.1
= control target key start
LH: loop header
LB: loop body
LE: loop exit
PB: predicated region body
PF: predicated region fallthrough
CT: control target
= control target key end

     0   :  { %s1332_s0 = inlined_call_operand.hbm [shape: f32[1,128], index: 0, kind: input, shape index: {}]   ;;  %s1333_s1 = inlined_call_operand.hbm [shape: bf16[128,256], index: 1, kind: input, shape index: {}]   ;;  %s1334_s2 = inlined_call_operand.hbm [shape: bf16[2,32,128], index: 2, kind: input, shape index: {}]   ;;  %s1335_s3 = inlined_call_operand.hbm [shape: f32[2,32,128], index: 3, kind: output, shape index: {}]  }
   0x1   :  { %1347 = sst [smem:[#allocation21_spill]] %s1332_s0 }
   0x2   :  { %1348 = sst [smem:[#allocation22_spill]] %s1333_s1 }
   0x3   :  { %8 = vsyncpa [#allocation6], 0 }
   0x4   :  { %9 = vsyncpa [#allocation9], 0 }
   0x5   :  { %10 = vsyncpa [#allocation7], 0 }
   0x6   :  { %12 = vsyncpa [#allocation7 + $0x1], 0  ;;  %s1072_s12 = smov 0   ;;  %s1074_s13 = smov 0  }
   0x7   :  { %s1076_s14 = smov 0   ;;  %s1078_s15 = smov 0  }
   0x8   :  { %s1080_s16 = smov 0   ;;  %s1082_s17 = smov 0  }
   0x9   :  { %s1084_s18 = smov 0   ;;  %s1086_s19 = smov 0  }
   0xa LB: > { %1349 = sst [smem:[#allocation16_spill]] %s1010_s12  ;;  %s1113_s20 = sadd.s32 4294967295, %s1038_s19   ;;  %s1038_s19 = sphi %s1086_s19, %s18_s19   ;;  %s1034_s18 = sphi %s1084_s18, %s1382_s18   ;;  %s1030_s17 = sphi %s1082_s17, %s1377_s17   ;;  %s1026_s16 = sphi %s1080_s16, %s1381_s16   ;;  %s1022_s15 = sphi %s1078_s15, %s1376_s15   ;;  %s1018_s14 = sphi %s1076_s14, %s1380_s14   ;;  %s1014_s13 = sphi %s1074_s13, %s1379_s13   ;;  %s1010_s12 = sphi %s1072_s12, %s1378_s12  }
   0xb   : > { %1350 = sst [smem:[#allocation17_spill]] %s1030_s17  ;;  %s652_s21 = sadd.s32 4294967294, %s1038_s19  }
   0xc   : > { %1351 = sst [smem:[#allocation18_spill]] %s1038_s19  ;;  %p88_p0 = scmp.ne.s32.totalorder %s1018_s14, %s1014_s13 }
   0xd   : > { %p89_p1 = scmp.eq.s32.totalorder %s1038_s19, 0  ;;  %p94_p2 = scmp.ne.s32.totalorder %s1014_s13, %s1010_s12 }
   0xe   : > { %p1337_p3 = scmp.eq.s32.totalorder %s1113_s20, 0  ;;  %p120_p4 = scmp.eq.s32.totalorder %s1113_s20, 3 }
   0xf   : > { %p1124_p5 = por %p89_p1, %p88_p0  ;;  %p126_p6 = scmp.eq.s32.totalorder %s652_s21, 3 }
  0x10   : > { %p1130_p7 = por %p1337_p3, %p94_p2  ;;  %p1134_p8 = por %p120_p4, %p88_p0 }
  0x11   : > { %p1138_p9 = por %p126_p6, %p94_p2  ;;  %p653_p10 = scmp.ge.s32.totalorder %s1038_s19, 1 }
  0x12   : > { %s1353_s24 = scalar_select %p1130_p7, 1, 0 }
  0x13   : > { %s1354_s25 = scalar_select %p1134_p8, 1, 0 }
  0x14   : > { %s1355_s26 = scalar_select %p1138_p9, 1, 0 }
  0x15   : > { %p133_p11 = scmp.lt.s32.totalorder %s1038_s19, 5  ;;  %s1040_s28 = smov [#allocation5]  }
  0x16   : > { %1356 = sst [smem:[#allocation19_spill]] %s1355_s26  ;;  %s146_s29 = sshll.u32 %s1040_s28, 4  ;;  %s147_s29 = int_to_ptr.vmem [resolvable:$true] %s146_s29 }
  0x17   : > { %p1144_p12 = pnand %p653_p10, %p133_p11  ;;  %p726_p13 = scmp.lt.s32.totalorder %s1038_s19, 4 }
  0x18   : > { %s1041_s4 = smov [#allocation8]   ;;  %s865_s7 = scalar_lea.vmem %s147_s29, 16 }
  0x19   : > { %s1357_s27 = scalar_select %p1144_p12, 1, 0 }
  0x1a   : > { %p709_p0 = pneg %p1144_p12  ;;  %p1153_p1 = pnand %p726_p13, %p1124_p5 }
  0x1b   : > { %s156_s5 = sshll.u32 %s1041_s4, 4  ;;  %p866_p6 = scmp.ne.s32.totalorder %s147_s29, %s865_s7  ;;  %s157_s5 = int_to_ptr.vmem [resolvable:$true] %s156_s5 }
  0x1c   : > { %s1358_s30 = scalar_select %p1153_p1, 1, 0 }
  0x1d   : > { %p1159_p2 = pnand %p709_p0, %p1337_p3  ;;  %s872_s8 = scalar_lea.vmem %s147_s29, 32 }
  0x1e   : > { %p873_p11 = scmp.lt.s32.totalorder %s147_s29, %s147_s29  ;;  %p874_p13 = scmp.lt.s32.totalorder %s872_s8, %s865_s7 }
  0x1f   : > { %p856_p4 = pneg %p1159_p2 }
  0x20   : > { %p875_p9 = por %p874_p13, %p873_p11 }
  0x21   : > { %p868_p5 = pnand %p866_p6, %p856_p4 }
  0x23   : > { %p869_p10 = pneg %p868_p5 }
  0x25   : > { %p876_p8 = pnand %p875_p9, %p869_p10 }
  0x27   : > { %879 = shalt.err (!%p876_p8)
}
  0x28   : > { %s1360_s0 = sld [smem:[#allocation21_spill]]  ;;  %s891_s11 = scalar_lea.vmem %s157_s5, 2048 }
  0x29   : > { %p892_p0 = scmp.ne.s32.totalorder %s157_s5, %s891_s11  ;;  %p899_p5 = scmp.lt.s32.totalorder %s157_s5, %s157_s5 }
  0x2a   : > { %p900_p7 = scmp.lt.s32.totalorder %s891_s11, %s891_s11 }
  0x2b   : > { %p894_p3 = pnand %p892_p0, %p856_p4 }
  0x2c   : > { %p901_p12 = por %p900_p7, %p899_p5 }
  0x2d   : > { %p895_p6 = pneg %p894_p3 }
  0x2e   : > { %712 = dma.hbm_to_vmem [thread:$0]  (!%p1159_p2), %s1360_s0, 16, %s147_s29, [#allocation6]  }
  0x2f   : > { %p902_p1 = pnand %p901_p12, %p895_p6 }
  0x31   : > { %905 = shalt.err (!%p902_p1)
}
  0x32   : > { %s1042_s21 = smov 128   ;;  %s1043_s23 = smov 8  }
  0x33   : > { %s1361_s1 = sld [smem:[#allocation22_spill]]  ;;  %s27_s4 = sadd.s32 1, %s1030_s17 }
  0x34   : > { %s30_s7 = sadd.s32 1, %s1034_s18  ;;  %p28_p3 = scmp.ge.s32.totalorder %s27_s4, 2 }
  0x35   : > { %s170_s8 = sand.u32 1, %s1038_s19   ;;  %s172_s9 = sand.u32 1, %s1018_s14  }
  0x36   : > { %s1384_s4 = smov (%p28_p3, %s27_s4), 0  ;;  %s1386_s7 = smov (!%p28_p3, %s30_s7), %s1034_s18 }
  0x37   : > { %1362 = sst [smem:[#allocation20_spill]] %s1384_s4  ;;  %s77_s10 = ssub.s32 %s1030_s17, %s1384_s4 }
  0x38   : > { %s657_s11 = sshll.u32 %s172_s9, 3  ;;  %p32_p7 = scmp.ge.s32.totalorder %s1386_s7, 2 }
  0x39   : > { %715 = dma.hbm_to_vmem [thread:$0]  (!%p1159_p2), %s1361_s1, 2048, %s157_s5, [#allocation9], %s1042_s21, %s1042_s21, %s1043_s23  }
  0x3a   : > { %s658_s6 = sshll.u32 %s1030_s17, 1  ;;  %s659_s22 = sshll.u32 %s1034_s18, 2 }
  0x3b   : > { %s1388_s7 = smov (%p32_p7, %s1386_s7), 0  ;;  %s180_s5 = sadd.s32 %s659_s22, %s658_s6 }
  0x3c   : > { %s174_s21 = scalar_lea.vmem [#allocation10], %s657_s11  ;;  %s76_s28 = ssub.s32 %s1034_s18, %s1388_s7 }
  0x3d   : > { %s183_s23 = sshll.u32 %s174_s21, 4  ;;  %s660_s29 = sshll.u32 %s180_s5, 6  ;;  %s184_s23 = int_to_ptr.vmem [resolvable:$true] %s183_s23 }
  0x3e   : > { %s78_s0 = sor.u32 %s77_s10, %s76_s28  ;;  %s182_s12 = scalar_lea.hbm %s1334_s2, %s660_s29 }
  0x3f   : > { %p79_p8 = scmp.eq.s32.totalorder %s78_s0, 0  ;;  %s1363_s9 = sadd.s32 1, %s1018_s14 }
  0x40   : > { %s171_s17 = scalar_lea.sflag [#allocation6], %s170_s8  ;;  %p1364_p9 = scmp.ne.s32.totalorder %s1358_s30, 0 }
  0x41   : > { %s1202_s4 = scalar_select %p79_p8, %s1018_s14, %s1363_s9  }
  0x42   : > { %p908_p12 = pneg %p1364_p9  ;;  %s919_s19 = scalar_lea.vmem %s184_s23, 128 }
  0x43   : > { %p920_p1 = scmp.ne.s32.totalorder %s184_s23, %s919_s19  ;;  %s1044_s22 = smov [#allocation10]  }
  0x44   : > { %s924_s11 = sshll.u32 %s1044_s22, 4  ;;  %s925_s11 = int_to_ptr.vmem [resolvable:$false] %s924_s11 }
  0x45   : > { %p922_p2 = pnand %p920_p1, %p908_p12  ;;  %s926_s10 = scalar_lea.vmem %s925_s11, 256 }
  0x46   : > { %p927_p10 = scmp.lt.s32.totalorder %s184_s23, %s925_s11  ;;  %p928_p11 = scmp.lt.s32.totalorder %s926_s10, %s919_s19 }
  0x47   : > { %p923_p4 = pneg %p922_p2 }
  0x48   : > { %p929_p13 = por %p928_p11, %p927_p10 }
  0x4a   : > { %p930_p0 = pnand %p929_p13, %p923_p4 }
  0x4c   : > { %933 = shalt.err (!%p930_p0)
}
  0x4d   : > { %s1045_s0 = smov 64   ;;  %s1046_s1 = smov 4  }
  0x4e   : > { %719 = dma.hbm_to_vmem [thread:$0]  (!%p1364_p9), %s182_s12, 128, %s184_s23, %s171_s17, %s1045_s0, %s1045_s0, %s1046_s1  }
  0x4f   : > { %p1365_p6 = scmp.ne.s32.totalorder %s1357_s27, 0 }
  0x50   : > { %p1366_p5 = scmp.eq.s32.totalorder (!%p1365_p6), %s1113_s20, 0 }
  0x51   : > { %195 = sbr.rel (%p1365_p6) target bundleno = 450 (0x1c2), region = 32 }
  0x56   : > { %993 = dma.done.wait (%p1366_p5), [#allocation6], 16   ;;  %p1367_p3 = pmov %p1366_p5 }
  0x58   : > { %995 = vsyncadd (%p1367_p3), [#allocation6], 4294967280  ;;  %p1368_p7 = pmov %p1367_p3 }
  0x59   : > { %p1369_p8 = pmov %p1367_p3 }
  0x5a   : > { %997 = dma.done.wait (%p1368_p7), [#allocation9], 2048  }
  0x5b   : > { %999 = vsyncadd (%p1369_p8), [#allocation9], 4294965248  ;;  %s205_s19 = sand.u32 1, %s1113_s20   ;;  %s1220_s12 = sand.u32 1, %s1014_s13  }
  0x5c   : > { %s664_s17 = sshll.u32 %s1220_s12, 3  ;;  %s206_s26 = scalar_lea.sflag [#allocation6], %s205_s19 }
  0x5d   : > { %s1223_s27 = scalar_lea.vmem [#allocation10], %s664_s17  ;;  %p1370_p9 = scmp.ne.s32.totalorder %s1353_s24, 0 }
  0x5f   : > { %1001 = dma.done.wait (%p1370_p9), %s206_s26, 128  }
  0x60   : > { %1003 = vsyncadd (%p1370_p9), %s206_s26, 4294967168  ;;  %s665_s30 = sshll.u32 %s1220_s12, 4  ;;  %p666_p12 = scmp.ne.s32.totalorder %s1022_s15, 0 }
  0x61   : > { %s1230_s8 = scalar_lea.vmem [#allocation11], %s665_s30 }
  0x62   : > { %238 = sbr.rel (%p666_p12) target bundleno = 105 (0x69), region = 48 }
  0x67   : > { %v1047_v0 = vmov 0.0  }
  0x68   : > { %239 = vst [vmem:[#allocation4] sm:$0x1] %v1047_v0 }
  0x69 PF: > { %v804_v1 = vld [vmem:[#allocation8 + $0x74] ss:$8 sps:$4 sm:$0xff]   ;;  %v806_v2 = vld [vmem:[#allocation8 + $0x70] ss:$8 sps:$4 sm:$0xff]   ;;  %v1048_v3 = vmov 0   ;;  %v1234_v18 = vld [vmem:[%s1223_s27] sm:$0xff]   ;;  %v454_v47 = vlaneseq }
  0x6a   : > { %378 = vmatprep.mubr.bf16.mxu0 %v1048_v3  ;;  %346 = vmatprep.subr.bf16.mxu0 %v804_v1  ;;  %v807_v4 = vld [vmem:[#allocation8 + $0x64] ss:$8 sps:$4 sm:$0xff]   ;;  %v809_v5 = vld [vmem:[#allocation8 + $0x60] ss:$8 sps:$4 sm:$0xff]   ;;  %v810_v6 = vld [vmem:[#allocation8 + $0x54] ss:$8 sps:$4 sm:$0xff]   ;;  %v242_v55 = vunpack.c.l.bf16 %v1234_v18  ;;  %v243_v61 = vunpack.c.h.bf16 %v1234_v18 }
  0x6b   : > { %347 = vmatpush1.bf16.msra.mxu0 %v806_v2  ;;  %v812_v7 = vld [vmem:[#allocation8 + $0x50] ss:$8 sps:$4 sm:$0xff]   ;;  %v813_v8 = vld [vmem:[#allocation8 + $0x44] ss:$8 sps:$4 sm:$0xff]   ;;  %v815_v9 = vld [vmem:[#allocation8 + $0x40] ss:$8 sps:$4 sm:$0xff]  }
  0x6c   : > { %348 = vmatprep.subr.bf16.mxu0 %v807_v4  ;;  %v816_v10 = vld [vmem:[#allocation8 + $0x34] ss:$8 sps:$4 sm:$0xff]   ;;  %v818_v11 = vld [vmem:[#allocation8 + $0x30] ss:$8 sps:$4 sm:$0xff]   ;;  %v819_v12 = vld [vmem:[#allocation8 + $0x24] ss:$8 sps:$4 sm:$0xff]  }
  0x6d   : > { %v821_v13 = vld [vmem:[#allocation8 + $0x20] ss:$8 sps:$4 sm:$0xff]   ;;  %v822_v14 = vld [vmem:[#allocation8 + $0x14] ss:$8 sps:$4 sm:$0xff]   ;;  %v824_v15 = vld [vmem:[#allocation8 + $0x10] ss:$8 sps:$4 sm:$0xff]  }
  0x6e   : > { %v825_v16 = vld [vmem:[#allocation8 + $0x4] ss:$8 sps:$4 sm:$0xff]   ;;  %v827_v17 = vld [vmem:[#allocation8] ss:$8 sps:$4 sm:$0xff]   ;;  %v688_v28 = vld [vmem:[#allocation5] ss:$0 sm:$0xff] }
  0x6f   : > { %349 = vmatpush1.bf16.msra.mxu0 %v809_v5  ;;  %v1237_v51 = vshrl.u32 %v454_v47, 7  ;;  %s692_s20 = sshll.u32 %s1022_s15, 1  ;;  %s693_s24 = sshll.u32 %s1026_s16, 2 }
  0x70   : > { %350 = vmatprep.subr.bf16.mxu0 %v810_v6  ;;  %s539_s6 = sadd.s32 %s693_s24, %s692_s20  ;;  %s542_s16 = sshll.u32 %s1230_s8, 4  ;;  %s1278_s16 = int_to_ptr.vmem [resolvable:$true] %s542_s16 }
  0x71   : > { %vm456_vm0 = vcmp.ge.s32.totalorder %v1237_v51, 1  ;;  %vm457_vm3 = vcmp.ge.s32.totalorder %v1237_v51, 2  ;;  %vm458_vm6 = vcmp.ge.s32.totalorder %v1237_v51, 4  ;;  %s694_s15 = sshll.u32 %s539_s6, 7  ;;  %s527_s28 = scalar_lea.sflag [#allocation7], %s1220_s12 }
  0x72   : > { %s1276_s23 = scalar_lea.hbm %s1335_s3, %s694_s15  ;;  %s934_s29 = scalar_lea.vmem %s1278_s16, 256 }
  0x73   : > { %351 = vmatpush1.bf16.msra.mxu0 %v812_v7  ;;  %p935_p1 = scmp.ne.s32.totalorder %s1278_s16, %s934_s29  ;;  %p1371_p2 = scmp.ne.s32.totalorder %s1354_s25, 0 }
  0x74   : > { %352 = vmatprep.subr.bf16.mxu0 %v813_v8  ;;  %s1049_s9 = smov [#allocation11]  }
  0x75   : > { %p936_p4 = pnand %p935_p1, %p1371_p2  ;;  %s938_s22 = sshll.u32 %s1049_s9, 4  ;;  %s939_s22 = int_to_ptr.vmem [resolvable:$false] %s938_s22 }
  0x76   : > { %s940_s11 = scalar_lea.vmem %s939_s22, 512  ;;  %p941_p11 = scmp.lt.s32.totalorder %s1278_s16, %s939_s22 }
  0x77   : > { %353 = vmatpush1.bf16.msra.mxu0 %v815_v9  ;;  %p937_p10 = pneg %p936_p4  ;;  %p942_p13 = scmp.lt.s32.totalorder %s940_s11, %s934_s29 }
  0x78   : > { %354 = vmatprep.subr.bf16.mxu0 %v816_v10 }
  0x79   : > { %p943_p0 = por %p942_p13, %p941_p11 }
  0x7b   : > { %355 = vmatpush1.bf16.msra.mxu0 %v818_v11  ;;  %p944_p6 = pnand %p943_p0, %p937_p10 }
  0x7c   : > { %356 = vmatprep.subr.bf16.mxu0 %v819_v12 }
  0x7f   : > { %357 = vmatpush1.bf16.msra.mxu0 %v821_v13 }
  0x80   : > { %358 = vmatprep.subr.bf16.mxu0 %v822_v14 }
  0x83   : > { %359 = vmatpush1.bf16.msra.mxu0 %v824_v15 }
  0x84   : > { %360 = vmatprep.subr.bf16.mxu0 %v825_v16 }
  0x87   : > { %361 = vmatpush1.bf16.msra.mxu0 %v827_v17 }
  0x8a   : > { %379 = vmatmul.mubr.bf16.vlgmr.msra.gmra.mxu0 %v1234_v18 }
 0x14a   : > { %v380_v19 = vpop.f32.mrf.mxu0 }
 0x14b   : > { %v684_v20 = vmul.f32 -1.442695, %v380_v19 }
 0x14c   : > { %v382_v21 = vpop.f32.mrf.mxu0 }
 0x14d   : > { %830 = vpow2.f32 %v684_v20  ;;  %v686_v30 = vmul.f32 -1.442695, %v382_v21 }
 0x14e   : > { %v384_v22 = vpop.f32.mrf.mxu0 }
 0x14f   : > { %v685_v23 = vmul.f32 -1.442695, %v384_v22 }
 0x150   : > { %v386_v32 = vpop.f32.mrf.mxu0 }
 0x151   : > { %832 = vpow2.f32 %v685_v23  ;;  %v687_v35 = vmul.f32 -1.442695, %v386_v32 }
 0x15a   : > { %v831_v24 = vpop.eup %830 }
 0x15b   : > { %v395_v25 = vadd.f32 1.0, %v831_v24 }
 0x15d   : > { %834 = vrcp.f32 %v395_v25 }
 0x15e   : > { %v833_v26 = vpop.eup %832 }
 0x15f   : > { %v396_v27 = vadd.f32 1.0, %v833_v26 }
 0x161   : > { %836 = vrcp.f32 %v396_v27 }
 0x162   : > { %838 = vpow2.f32 %v686_v30 }
 0x16a   : > { %v835_v29 = vpop.eup %834 }
 0x16b   : > { %v420_v31 = vmul.f32 %v835_v29, %v688_v28 }
 0x16d   : > { %v422_v33 = vmul.f32 1.442695, %v420_v31 }
 0x16e   : > { %v837_v34 = vpop.eup %836 }
 0x16f   : > { %840 = vpow2.f32 %v422_v33  ;;  %v421_v36 = vmul.f32 %v837_v34, %v688_v28  ;;  %v839_v38 = vpop.eup %838 }
 0x170   : > { %842 = vpow2.f32 %v687_v35  ;;  %v407_v41 = vadd.f32 1.0, %v839_v38 }
 0x171   : > { %v424_v37 = vmul.f32 1.442695, %v421_v36 }
 0x173   : > { %844 = vpow2.f32 %v424_v37  ;;  %v689_v37 = vld [vmem:[#allocation4] ss:$0 sm:$0xff] }
 0x174   : > { %846 = vrcp.f32 %v407_v41 }
 0x17c   : > { %v841_v39 = vpop.eup %840 }
 0x17d   : > { %v426_v40 = vmul.f32 %v841_v39, %v841_v39  ;;  %v843_v42 = vpop.eup %842  ;;  %v462_v52 = vrot.slane %v841_v39, 7 }
 0x17e   : > { %v408_v48 = vadd.f32 1.0, %v843_v42 }
 0x17f   : > { %v428_v43 = vsub.f32 1.0, %v426_v40  ;;  %v463_v53 = vsel %vm456_vm0, %v462_v52, 1.0 }
 0x180   : > { %v845_v44 = vpop.eup %844  ;;  %v468_v57 = vmul.f32 %v841_v39, %v463_v53 }
 0x181   : > { %v430_v45 = vmax.f32 %v428_v43, 0.0  ;;  %v427_v46 = vmul.f32 %v845_v44, %v845_v44  ;;  %v847_v54 = vpop.eup %846  ;;  %v496_v59 = vrot.slane %v845_v44, 7 }
 0x182   : > { %v446_v63 = vmul.f32 %v847_v54, %v242_v55  ;;  %v469_v2 = vrot.slane %v468_v57, 6 }
 0x183   : > { %848 = vrsqrt.f32 %v430_v45  ;;  %v429_v49 = vsub.f32 1.0, %v427_v46  ;;  %vm434_vm1 = vcmp.eq.f32.partialorder %v430_v45, inf  ;;  %v437_v60 = vand.u32 2147483648, %v430_v45 }
 0x184   : > { %850 = vrcp.f32 %v408_v48  ;;  %vm436_vm2 = vcmp.eq.f32.partialorder %v430_v45, 0.0  ;;  %v497_v5 = vsel %vm456_vm0, %v496_v59, 1.0  ;;  %v470_v11 = vsel %vm457_vm3, %v469_v2, 1.0 }
 0x185   : > { %v431_v50 = vmax.f32 %v429_v49, 0.0  ;;  %v502_v12 = vmul.f32 %v845_v44, %v497_v5  ;;  %v475_v17 = vmul.f32 %v470_v11, %v468_v57 }
 0x187   : > { %852 = vrsqrt.f32 %v431_v50  ;;  %vm441_vm4 = vcmp.eq.f32.partialorder %v431_v50, inf  ;;  %v444_v8 = vand.u32 2147483648, %v431_v50  ;;  %vm443_vm5 = vcmp.eq.f32.partialorder %v431_v50, 0.0 }
 0x188   : > { %v503_v20 = vrot.slane %v502_v12, 6  ;;  %v476_v23 = vrot.slane %v475_v17, 4 }
 0x18a   : > { %v504_v26 = vsel %vm457_vm3, %v503_v20, 1.0  ;;  %v477_v30 = vsel %vm458_vm6, %v476_v23, 1.0 }
 0x18b   : > { %v509_v32 = vmul.f32 %v504_v26, %v502_v12  ;;  %v482_v35 = vmul.f32 %v477_v30, %v475_v17 }
 0x18d   : > { %v489_v43 = vmul.f32 %v689_v37, %v482_v35 }
 0x190   : > { %v849_v56 = vpop.eup %848 }
 0x191   : > { %v433_v58 = vmul.f32 %v849_v56, %v430_v45  ;;  %v851_v0 = vpop.eup %850 }
 0x192   : > { %v447_v9 = vmul.f32 %v851_v0, %v243_v61 }
 0x193   : > { %v435_v62 = vsel %vm434_vm1, %v430_v45, %v433_v58  ;;  %v519_v45 = vsub.s32 7, %v1237_v51 }
 0x194   : > { %v438_v1 = vsel %vm436_vm2, %v437_v60, %v435_v62  ;;  %v853_v3 = vpop.eup %852 }
 0x195   : > { %v448_v4 = vmul.f32 %v446_v63, %v438_v1  ;;  %v440_v6 = vmul.f32 %v853_v3, %v431_v50 }
 0x197   : > { %v464_v7 = vrot.slane %v448_v4, 7  ;;  %v442_v10 = vsel %vm441_vm4, %v431_v50, %v440_v6 }
 0x198   : > { %v445_v13 = vsel %vm443_vm5, %v444_v8, %v442_v10 }
 0x199   : > { %v465_v14 = vsel %vm456_vm0, %v464_v7, 0.0  ;;  %v449_v15 = vmul.f32 %v447_v9, %v445_v13 }
 0x19a   : > { %v466_v16 = vmul.f32 %v841_v39, %v465_v14  ;;  %v510_v39 = vrot.slane %v509_v32, 4 }
 0x19b   : > { %v498_v18 = vrot.slane %v449_v15, 7 }
 0x19c   : > { %v467_v19 = vadd.f32 %v466_v16, %v448_v4  ;;  %v511_v46 = vsel %vm458_vm6, %v510_v39, 1.0 }
 0x19d   : > { %v499_v22 = vsel %vm456_vm0, %v498_v18, 0.0  ;;  %v516_v50 = vmul.f32 %v511_v46, %v509_v32 }
 0x19e   : > { %v471_v21 = vrot.slane %v467_v19, 6  ;;  %v500_v24 = vmul.f32 %v845_v44, %v499_v22 }
 0x1a0   : > { %v472_v25 = vsel %vm457_vm3, %v471_v21, 0.0  ;;  %v501_v28 = vadd.f32 %v500_v24, %v449_v15 }
 0x1a1   : > { %v473_v27 = vmul.f32 %v472_v25, %v468_v57 }
 0x1a2   : > { %v505_v31 = vrot.slane %v501_v28, 6 }
 0x1a3   : > { %v474_v29 = vadd.f32 %v473_v27, %v467_v19 }
 0x1a4   : > { %v506_v34 = vsel %vm457_vm3, %v505_v31, 0.0 }
 0x1a5   : > { %v478_v33 = vrot.slane %v474_v29, 4  ;;  %v507_v36 = vmul.f32 %v506_v34, %v502_v12 }
 0x1a7   : > { %v479_v38 = vsel %vm458_vm6, %v478_v33, 0.0  ;;  %v508_v41 = vadd.f32 %v507_v36, %v501_v28 }
 0x1a8   : > { %v480_v40 = vmul.f32 %v479_v38, %v475_v17 }
 0x1a9   : > { %v512_v44 = vrot.slane %v508_v41, 4 }
 0x1aa   : > { %v481_v42 = vadd.f32 %v480_v40, %v474_v29 }
 0x1ab   : > { %v513_v48 = vsel %vm458_vm6, %v512_v44, 0.0 }
 0x1ac   : > { %v490_v47 = vadd.f32 %v489_v43, %v481_v42  ;;  %v514_v49 = vmul.f32 %v513_v48, %v509_v32 }
 0x1ae   : > { %491 = vst [vmem:[%s1230_s8] sm:$0xff] %v490_v47  ;;  %v520_v52 = vrot.slane %v490_v47, %v519_v45  ;;  %v515_v53 = vadd.f32 %v514_v49, %v508_v41 }
 0x1b0   : > { %v521_v54 = vmul.f32 %v520_v52, %v516_v50 }
 0x1b2   : > { %v522_v51 = vadd.f32 %v521_v54, %v515_v53 }
 0x1b4   : > { %690 = vst [vmem:[%s1230_s8 + $0x8] sm:$0xff] %v522_v51  ;;  %525 = vst [vmem:[#allocation4 - $0x7] sm:$0x80] %v522_v51 }
 0x1b5   : > { %947 = shalt.err (!%p944_p6)
}
 0x1b6   : > { %s948_s10 = scalar_lea.hbm %s1276_s23, 256  ;;  %s952_s19 = scalar_lea.hbm %s1335_s3, 1024 }
 0x1b7   : > { %p949_p5 = scmp.ne.s32.totalorder %s1276_s23, %s948_s10  ;;  %p953_p8 = scmp.lt.s32.totalorder %s1276_s23, %s1335_s3 }
 0x1b8   : > { %p954_p9 = scmp.lt.s32.totalorder %s952_s19, %s948_s10 }
 0x1b9   : > { %p950_p3 = pnand %p949_p5, %p1371_p2 }
 0x1ba   : > { %p955_p12 = por %p954_p9, %p953_p8 }
 0x1bb   : > { %p951_p7 = pneg %p950_p3 }
 0x1bd   : > { %p956_p1 = pnand %p955_p12, %p951_p7 }
 0x1bf   : > { %959 = shalt.err (!%p956_p1)
}
 0x1c0   : > { %s1050_s27 = smov 128   ;;  %s1051_s30 = smov 8  }
 0x1c1   : > { %707 = dma.vmem_to_hbm [thread:$0]  (%p1371_p2), %s1278_s16, 256, %s1276_s23, %s527_s28, %s1050_s27, %s1050_s27, %s1051_s30  }
 0x1c2 PF: > { %s1372_s8 = sld [smem:[#allocation18_spill]] }
 0x1c3   : > { %s1373_s20 = sld [smem:[#allocation16_spill]] }
 0x1c4   : > { %s1374_s24 = sld [smem:[#allocation19_spill]] }
 0x1c8   : > { %p729_p4 = scmp.ge.s32.totalorder %s1372_s8, 2 }
 0x1c9   : > { %s557_s6 = sand.u32 1, %s1373_s20  }
 0x1ca   : > { %p1375_p10 = scmp.ne.s32.totalorder %s1374_s24, 0  ;;  %s558_s15 = scalar_lea.sflag [#allocation7], %s557_s6 }
 0x1cc   : > { %p721_p11 = pnand %p729_p4, %p1375_p10 }
 0x1ce   : > { %p722_p13 = pneg %p721_p11 }
 0x1d0   : > { %1005 = dma.done.wait (%p722_p13), %s558_s15, 256  }
 0x1d1   : > { %1007 = vsyncadd (%p722_p13), %s558_s15, 4294967040  ;;  %s18_s19 = sadd.s32 1, %s1372_s8   ;;  %s1376_s15 = sld [smem:[#allocation17_spill]] }
 0x1d2   : > { %p15_p0 = scmp.ge.s32.totalorder %s18_s19, 6   ;;  %s1377_s17 = sld [smem:[#allocation20_spill]] }
 0x1d3   : > { %s1378_s12 = smov %s1014_s13  ;;  %s1379_s13 = smov %s1018_s14 }
 0x1d4   : > { %s1380_s14 = smov %s1202_s4  ;;  %s1381_s16 = smov %s1034_s18 }
 0x1d5   : > { %s1382_s18 = smov %s1388_s7  ;;  %17 = sbr.rel (!%p15_p0) target bundleno = 10 (0xa), region = 91 }
 0x1da   :  { %563 = vsyncpa [#allocation6], 1 }
 0x1db   :  { %565 = vsyncpa [#allocation6 + $0x1], 1 }
 0x1dc   :  { %566 = vsyncpa [#allocation9], 1 }
 0x1dd   :  { %567 = vsyncpa [#allocation7], 1 }
 0x1de   :  { %569 = vsyncpa [#allocation7 + $0x1], 1 }

</bundles_post_ra>
